<compile_context>
chip_gen: v7x
topology: tpu7x:2x2x1
jax: 0.10.0
libtpu: 0.0.40
codegen_flags: <defaults>
</compile_context>

<pallas_src>
import functools

import jax
import jax.numpy as jnp
import numpy as np
from jax.experimental import pallas as pl
from jax.experimental.pallas import tpu as pltpu

_LANE = 128
_TILE_CANDIDATES = (32768, 16384, 8192, 4096, 2048, 1024, 512, 256, 128)


def _pick_tile(hw, c, max_block_bytes=4 << 20):
    """Largest lane-aligned spatial tile (<= hw) whose (C, T) f32 block fits budget."""
    if hw < _LANE:
        return hw                    # full-extent block (allowed: equals array dim)
    for t in _TILE_CANDIDATES:
        if t <= hw and c * t * 4 <= max_block_bytes:
            return t
    return _LANE


# ---------------------------------------------------------------------------
# Kernel 1: TextProjectionHead + single-query MultiheadAttention
#           (online softmax over HW tiles, bf16 MXU operands, f32 accumulate).
# ---------------------------------------------------------------------------
def _text_attn_kernel(text_ref, inter_ref,
                      tpw1_ref, tpb1_ref, tpw2_ref, tpb2_ref,
                      wq_ref, bq_ref, wkv_ref, bkv_ref,
                      wo_ref, bo_ref, gt_ref,
                      out_ref,
                      m_sc, l_sc, acc_sc, ws_sc, *, scale, hw):
    f32 = jnp.float32
    bf16 = jnp.bfloat16
    kv_i = pl.program_id(1)

    @pl.when(kv_i == 0)
    def _():
        # Init online-softmax state.
        m_sc[...] = jnp.full_like(m_sc, -jnp.inf)
        l_sc[...] = jnp.zeros_like(l_sc)
        acc_sc[...] = jnp.zeros_like(acc_sc)
        # Query path (tiny, once per batch row): Linear -> ReLU -> Linear ->
        # q in-proj; fold per-head structure and 1/sqrt(hd) into (nh, C). f32.
        t = text_ref[0].astype(f32)                                        # (1, E)
        h = jnp.dot(t, tpw1_ref[...], preferred_element_type=f32) + tpb1_ref[...]
        h = jnp.maximum(h, 0.0)
        q = jnp.dot(h, tpw2_ref[...], preferred_element_type=f32) + tpb2_ref[...]
        qp = jnp.dot(q, wq_ref[...], preferred_element_type=f32) + bq_ref[...]
        ws_sc[...] = gt_ref[...] * (qp * scale)                            # (nh, C)

    # Fused K|V projection for this HW tile (bf16 MXU operands, f32 accumulate).
    kv16 = inter_ref[0].astype(bf16)                                       # (C, T)
    kvp = jnp.dot(wkv_ref[...], kv16, preferred_element_type=f32) + bkv_ref[...]
    C = kv16.shape[0]
    T = kv16.shape[1]
    kp = kvp[:C]                                                           # (C, T)
    vp = kvp[C:]                                                           # (C, T)

    # Per-head scores for this tile.
    s = jnp.dot(ws_sc[...].astype(bf16), kp.astype(bf16),
                preferred_element_type=f32)                                # (nh, T)

    if hw % T != 0:
        # Partial tail tile: mask invalid lanes (scores -> -inf, values -> 0).
        rem = hw - kv_i * T
        valid = jax.lax.broadcasted_iota(jnp.int32, (1, T), 1) < rem
        s = jnp.where(valid, s, -jnp.inf)
        vp = jnp.where(valid, vp, 0.0)

    # Online softmax update.
    m_new = jnp.maximum(m_sc[...], jnp.max(s, axis=-1, keepdims=True))     # (nh, 1)
    alpha = jnp.exp(m_sc[...] - m_new)
    p = jnp.exp(s - m_new)                                                 # (nh, T)
    l_sc[...] = alpha * l_sc[...] + jnp.sum(p, axis=-1, keepdims=True)
    acc_sc[...] = alpha * acc_sc[...] + jax.lax.dot_general(
        p.astype(bf16), vp.astype(bf16), (((1,), (1,)), ((), ())),
        preferred_element_type=f32)                                        # (nh, C)
    m_sc[...] = m_new

    @pl.when(kv_i == pl.num_programs(1) - 1)
    def _():
        inv_l = pl.reciprocal(l_sc[...], approx=True)                      # EUP
        ctx_h = acc_sc[...] * inv_l                                        # (nh, C)
        ctx = jnp.sum(ctx_h * gt_ref[...], axis=0, keepdims=True)          # (1, C)
        out_ref[0] = (jnp.dot(ctx, wo_ref[...], preferred_element_type=f32)
                      + bo_ref[...])


def text_attention(text_embed, inter_cf, p, num_heads):
    B, E = text_embed.shape
    _, C, HW = inter_cf.shape
    hd = C // num_heads
    T = _pick_tile(HW, C)
    n_kv = pl.cdiv(HW, T)

    head_ids = np.repeat(np.arange(num_heads), hd)
    GT = jnp.asarray((head_ids[None, :] == np.arange(num_heads)[:, None])
                     .astype(np.float32))                                  # (nh, C)

    wq, wk, wv = jnp.split(p['attn_in_w'], 3, axis=0)
    bq, bk, bv = jnp.split(p['attn_in_b'], 3, axis=0)
    wkv = jnp.concatenate([wk, wv], axis=0).astype(jnp.bfloat16)           # (2C, C)
    bkv = jnp.concatenate([bk, bv]).astype(jnp.float32)[:, None]           # (2C, 1)

    weights = [
        p['proj_w1'].T, p['proj_b1'][None, :],
        p['proj_w2'].T, p['proj_b2'][None, :],
        wq.T, bq[None, :],
        wkv, bkv,
        p['attn_out_w'].T, p['attn_out_b'][None, :],
        GT,
    ]

    kernel = functools.partial(_text_attn_kernel,
                               scale=1.0 / float(np.sqrt(hd)), hw=HW)
    in_specs = [
        pl.BlockSpec((1, 1, E), lambda b, j: (b, 0, 0)),
        pl.BlockSpec((1, C, T), lambda b, j: (b, 0, j)),
    ] + [pl.BlockSpec(w.shape, lambda b, j: (0, 0)) for w in weights]

    out = pl.pallas_call(
        kernel,
        out_shape=jax.ShapeDtypeStruct((B, 1, C), jnp.float32),
        grid_spec=pltpu.PrefetchScalarGridSpec(
            num_scalar_prefetch=0,
            grid=(B, n_kv),
            in_specs=in_specs,
            out_specs=pl.BlockSpec((1, 1, C), lambda b, j: (b, 0, 0)),
            scratch_shapes=[
                pltpu.VMEM((num_heads, 1), jnp.float32),   # m
                pltpu.VMEM((num_heads, 1), jnp.float32),   # l
                pltpu.VMEM((num_heads, C), jnp.float32),   # acc
                pltpu.VMEM((num_heads, C), jnp.float32),   # scaled head-masked q
            ]),
        compiler_params=pltpu.CompilerParams(
            dimension_semantics=("parallel", "arbitrary"),
            vmem_limit_bytes=48 * 1024 * 1024),
    )(text_embed[:, None, :].astype(jnp.float32), inter_cf, *weights)
    return out                                                             # (B, 1, C)


# ---------------------------------------------------------------------------
# Kernel 2: conv_gamma / conv_beta (fused 1x1 convs) + SFT modulation.
# ---------------------------------------------------------------------------
def _sft_kernel(x_ref, inter_ref, att_ref, w1_ref, wg2_ref, wb2_ref, out_ref):
    f32 = jnp.float32
    bf16 = jnp.bfloat16
    C = x_ref.shape[1]

    it16 = inter_ref[0].astype(bf16)                                       # (C, T)
    # Stage 1: fused [wg1; wb1] @ inter -> (2C, T), LeakyReLU(0.1) (max-form).
    h = jnp.dot(w1_ref[...], it16, preferred_element_type=f32)
    h = jnp.maximum(h, 0.1 * h)
    h16 = h.astype(bf16)
    # Stage 2: two independent (C,C)@(C,T) dots (no zero-padded block-diag).
    gamma = jnp.dot(wg2_ref[...], h16[:C], preferred_element_type=f32)     # (C, T)
    beta = jnp.dot(wb2_ref[...], h16[C:], preferred_element_type=f32)      # (C, T)

    t = att_ref[0].astype(f32)                                             # (C, 1)
    xi = x_ref[0].astype(f32)                                              # (C, T)
    out_ref[0] = (xi * (gamma + t) + (beta + t)).astype(out_ref.dtype)


def sft_apply(x_cf, inter_cf, att_col, p):
    B, C, HW = inter_cf.shape
    T = _pick_tile(HW, C)
    nblk = pl.cdiv(HW, T)

    bf16 = jnp.bfloat16
    w1 = jnp.concatenate([p['wg1'], p['wb1']], axis=0).astype(bf16)        # (2C, C)
    wg2 = p['wg2'].astype(bf16)                                            # (C, C)
    wb2 = p['wb2'].astype(bf16)                                            # (C, C)

    in_specs = [
        pl.BlockSpec((1, C, T), lambda b, j: (b, 0, j)),
        pl.BlockSpec((1, C, T), lambda b, j: (b, 0, j)),
        pl.BlockSpec((1, C, 1), lambda b, j: (b, 0, 0)),
        pl.BlockSpec(w1.shape, lambda b, j: (0, 0)),
        pl.BlockSpec(wg2.shape, lambda b, j: (0, 0)),
        pl.BlockSpec(wb2.shape, lambda b, j: (0, 0)),
    ]

    out = pl.pallas_call(
        _sft_kernel,
        out_shape=jax.ShapeDtypeStruct((B, C, HW), x_cf.dtype),
        grid_spec=pltpu.PrefetchScalarGridSpec(
            num_scalar_prefetch=0,
            grid=(B, nblk),
            in_specs=in_specs,
            out_specs=pl.BlockSpec((1, C, T), lambda b, j: (b, 0, j)),
        ),
        compiler_params=pltpu.CompilerParams(
            dimension_semantics=("parallel", "parallel"),
            vmem_limit_bytes=48 * 1024 * 1024),
    )(x_cf, inter_cf, att_col, w1, wg2, wb2)
    return out


# ---------------------------------------------------------------------------
# Full SFT_layer forward (wrapper; pure reshapes only — no HBM transposes).
# ---------------------------------------------------------------------------
def sft_layer_forward(x_nchw, inter_nchw, text_embed, params, num_heads=8):
    B, C, H, W = inter_nchw.shape
    HW = H * W
    x_cf = x_nchw.reshape(B, C, HW)            # pure reshape, keeps input dtype
    inter_cf = inter_nchw.reshape(B, C, HW)

    attended = text_attention(text_embed.astype(jnp.float32), inter_cf,
                              params, num_heads)               # (B, 1, C)
    att_col = attended.reshape(B, C, 1)                        # free reshape
    out_cf = sft_apply(x_cf, inter_cf, att_col, params)
    return out_cf.reshape(B, C, H, W)


# ---------------------------------------------------------------------------
# Pure-JAX reference (mirrors the PyTorch semantics) for validation.
# ---------------------------------------------------------------------------
def reference_forward(x, inter, text_embed, p, num_heads):
    def leaky(z):
        return jnp.where(z >= 0, z, 0.1 * z)

    def conv_pair(inp, w1, w2):
        y = leaky(jnp.einsum('bchw,oc->bohw', inp, w1))
        return jnp.einsum('bchw,oc->bohw', y, w2)

    img_gamma = conv_pair(inter, p['wg1'], p['wg2'])
    img_beta = conv_pair(inter, p['wb1'], p['wb2'])

    tp = jnp.maximum(text_embed @ p['proj_w1'].T + p['proj_b1'], 0.0) @ p['proj_w2'].T + p['proj_b2']

    B, C, H, W = inter.shape
    HW = H * W
    kv = jnp.transpose(inter.reshape(B, C, HW), (0, 2, 1))
    wq, wk, wv = jnp.split(p['attn_in_w'], 3, axis=0)
    bq, bk, bv = jnp.split(p['attn_in_b'], 3, axis=0)
    qp = tp[:, None, :] @ wq.T + bq
    kp = kv @ wk.T + bk
    vp = kv @ wv.T + bv
    hd = C // num_heads
    qh = qp.reshape(B, 1, num_heads, hd).transpose(0, 2, 1, 3)
    kh = kp.reshape(B, HW, num_heads, hd).transpose(0, 2, 1, 3)
    vh = vp.reshape(B, HW, num_heads, hd).transpose(0, 2, 1, 3)
    s = jnp.einsum('bnqd,bnkd->bnqk', qh, kh) / jnp.sqrt(jnp.float32(hd))
    a = jax.nn.softmax(s, axis=-1)
    ctx = jnp.einsum('bnqk,bnkd->bnqd', a, vh).transpose(0, 2, 1, 3).reshape(B, 1, C)
    att = ctx @ p['attn_out_w'].T + p['attn_out_b']
    t = att[:, 0, :][:, :, None, None]
    return x * (img_gamma + t) + (img_beta + t)


if __name__ == "__main__":
    num_heads = 8
    C = 32                           # channels_in == channels_out == C
    E = 64                           # synthetic CLIP text-embedding dim
    B = 2

    key = jax.random.PRNGKey(0)
    ks = jax.random.split(key, 16)

    def rn(k, shape, s=0.05):
        return jax.random.normal(k, shape, jnp.float32) * s

    params = {
        # conv_gamma / conv_beta: two bias-free 1x1 convs each, weights (C_out, C_in)
        'wg1': rn(ks[0], (C, C)), 'wg2': rn(ks[1], (C, C)),
        'wb1': rn(ks[2], (C, C)), 'wb2': rn(ks[3], (C, C)),
        # TextProjectionHead: Linear(E->C) -> ReLU -> Linear(C->C)
        'proj_w1': rn(ks[4], (C, E)), 'proj_b1': rn(ks[5], (C,)),
        'proj_w2': rn(ks[6], (C, C)), 'proj_b2': rn(ks[7], (C,)),
        # nn.MultiheadAttention packed in-proj + out-proj
        'attn_in_w': rn(ks[8], (3 * C, C)), 'attn_in_b': rn(ks[9], (3 * C,)),
        'attn_out_w': rn(ks[10], (C, C)), 'attn_out_b': rn(ks[11], (C,)),
    }
    # NOTE: self.text_gamma / self.text_beta conv stacks exist in __init__ but are
    # never used in forward, so they are not instantiated here.

    # Case 1: single-tile softmax path.
    # Case 2: 48x48 -> HW=2304, T=2048 -> multi-step online softmax + partial tail tile.
    # Case 3: 20x24 -> HW=480 (not 128-aligned) -> cdiv grid + lane masking path.
    for case, (H, W) in enumerate([(16, 16), (48, 48), (20, 24)]):
        kx, ki, kt = jax.random.split(jax.random.fold_in(key, 100 + case), 3)
        x = jax.random.normal(kx, (B, C, H, W), jnp.float32)
        inter = jax.random.normal(ki, (B, C, H, W), jnp.float32)
        text_embed = jax.random.normal(kt, (B, E), jnp.float32)

        out = jax.block_until_ready(
            sft_layer_forward(x, inter, text_embed, params, num_heads))
        ref = reference_forward(x, inter, text_embed, params, num_heads)
        # bf16 MXU operands (f32 accumulation) -> loosened tolerance vs pure-f32 ref.
        np.testing.assert_allclose(np.asarray(out), np.asarray(ref),
                                   rtol=3e-2, atol=3e-2)

    print("KERNEL_OK")
</pallas_src>

<mosaic_0001>
module attributes {stable_mosaic.version = 11 : i64} {
  func.func @_text_attn_kernel(%arg0: i32, %arg1: i32, %arg2: memref<1x1x64xf32, #tpu.memory_space<vmem>>, %arg3: memref<1x32x256xf32, #tpu.memory_space<vmem>>, %arg4: memref<64x32xf32, #tpu.memory_space<vmem>>, %arg5: memref<1x32xf32, #tpu.memory_space<vmem>>, %arg6: memref<32x32xf32, #tpu.memory_space<vmem>>, %arg7: memref<1x32xf32, #tpu.memory_space<vmem>>, %arg8: memref<32x32xf32, #tpu.memory_space<vmem>>, %arg9: memref<1x32xf32, #tpu.memory_space<vmem>>, %arg10: memref<64x32xbf16, #tpu.memory_space<vmem>>, %arg11: memref<64x1xf32, #tpu.memory_space<vmem>>, %arg12: memref<32x32xf32, #tpu.memory_space<vmem>>, %arg13: memref<1x32xf32, #tpu.memory_space<vmem>>, %arg14: memref<8x32xf32, #tpu.memory_space<vmem>>, %arg15: memref<1x1x32xf32, #tpu.memory_space<vmem>>, %arg16: memref<8x1xf32, #tpu.memory_space<vmem>>, %arg17: memref<8x1xf32, #tpu.memory_space<vmem>>, %arg18: memref<8x32xf32, #tpu.memory_space<vmem>>, %arg19: memref<8x32xf32, #tpu.memory_space<vmem>>) attributes {dimension_semantics = [#tpu.dimension_semantics<parallel>, #tpu.dimension_semantics<arbitrary>], iteration_bounds = array<i64: 2, 1>, scalar_prefetch = 0 : i64, scratch_operands = 4 : i64, tpu.core_type = #tpu.core_type<tc>, window_params = [{transform_indices = @transform_0, window_bounds = array<i64: 1, 1, 64>}, {transform_indices = @transform_1, window_bounds = array<i64: 1, 32, 256>}, {pipeline_mode = #tpu.pipeline_mode<synchronous>, transform_indices = @transform_2, window_bounds = array<i64: 64, 32>}, {pipeline_mode = #tpu.pipeline_mode<synchronous>, transform_indices = @transform_3, window_bounds = array<i64: 1, 32>}, {pipeline_mode = #tpu.pipeline_mode<synchronous>, transform_indices = @transform_4, window_bounds = array<i64: 32, 32>}, {pipeline_mode = #tpu.pipeline_mode<synchronous>, transform_indices = @transform_5, window_bounds = array<i64: 1, 32>}, {pipeline_mode = #tpu.pipeline_mode<synchronous>, transform_indices = @transform_6, window_bounds = array<i64: 32, 32>}, {pipeline_mode = #tpu.pipeline_mode<synchronous>, transform_indices = @transform_7, window_bounds = array<i64: 1, 32>}, {pipeline_mode = #tpu.pipeline_mode<synchronous>, transform_indices = @transform_8, window_bounds = array<i64: 64, 32>}, {pipeline_mode = #tpu.pipeline_mode<synchronous>, transform_indices = @transform_9, window_bounds = array<i64: 64, 1>}, {pipeline_mode = #tpu.pipeline_mode<synchronous>, transform_indices = @transform_10, window_bounds = array<i64: 32, 32>}, {pipeline_mode = #tpu.pipeline_mode<synchronous>, transform_indices = @transform_11, window_bounds = array<i64: 1, 32>}, {pipeline_mode = #tpu.pipeline_mode<synchronous>, transform_indices = @transform_12, window_bounds = array<i64: 8, 32>}, {transform_indices = @transform_13, window_bounds = array<i64: 1, 1, 32>}]} {
    %c0_i32 = arith.constant 0 : i32
    %0 = arith.cmpi eq, %arg1, %c0_i32 : i32
    %1 = arith.extui %0 : i1 to i32
    %c0_i32_0 = arith.constant 0 : i32
    %2 = arith.cmpi ne, %1, %c0_i32_0 : i32
    scf.if %2 {
      %cst_29 = arith.constant 0xFF800000 : f32
      %45 = vector.broadcast %cst_29 : f32 to vector<8x1xf32>
      %c0_30 = arith.constant 0 : index
      %c0_31 = arith.constant 0 : index
      %46 = vector.load %arg16[%c0_30, %c0_31] : memref<8x1xf32, #tpu.memory_space<vmem>>, vector<8x1xf32>
      tpu.vector_store %arg16[%c0_30, %c0_31], %45 {strides = array<i32>} : memref<8x1xf32, #tpu.memory_space<vmem>>, vector<8x1xf32>,
      %cst_32 = arith.constant 0.000000e+00 : f32
      %47 = vector.broadcast %cst_32 : f32 to vector<8x1xf32>
      %c0_33 = arith.constant 0 : index
      %c0_34 = arith.constant 0 : index
      %48 = vector.load %arg17[%c0_33, %c0_34] : memref<8x1xf32, #tpu.memory_space<vmem>>, vector<8x1xf32>
      tpu.vector_store %arg17[%c0_33, %c0_34], %47 {strides = array<i32>} : memref<8x1xf32, #tpu.memory_space<vmem>>, vector<8x1xf32>,
      %cst_35 = arith.constant 0.000000e+00 : f32
      %49 = vector.broadcast %cst_35 : f32 to vector<8x32xf32>
      %c0_36 = arith.constant 0 : index
      %c0_37 = arith.constant 0 : index
      %50 = vector.load %arg18[%c0_36, %c0_37] : memref<8x32xf32, #tpu.memory_space<vmem>>, vector<8x32xf32>
      tpu.vector_store %arg18[%c0_36, %c0_37], %49 {strides = array<i32>} : memref<8x32xf32, #tpu.memory_space<vmem>>, vector<8x32xf32>,
      %c0_38 = arith.constant 0 : index
      %c0_39 = arith.constant 0 : index
      %c0_40 = arith.constant 0 : index
      %51 = vector.load %arg2[%c0_38, %c0_39, %c0_40] : memref<1x1x64xf32, #tpu.memory_space<vmem>>, vector<1x1x64xf32>
      %52 = vector.shape_cast %51 : vector<1x1x64xf32> to vector<1x64xf32>
      %c0_41 = arith.constant 0 : index
      %c0_42 = arith.constant 0 : index
      %53 = vector.load %arg4[%c0_41, %c0_42] : memref<64x32xf32, #tpu.memory_space<vmem>>, vector<64x32xf32>
      %cst_43 = arith.constant dense<0.000000e+00> : vector<1x32xf32>
      %54 = tpu.matmul %52, %53, %cst_43 {dimension_numbers = #tpu.dot_dimension_numbers<[1], [0], [0], [1], [0, 0, 1, 1], [], []>} : vector<1x64xf32>, vector<64x32xf32>, vector<1x32xf32> -> vector<1x32xf32>
      %c0_44 = arith.constant 0 : index
      %c0_45 = arith.constant 0 : index
      %55 = vector.load %arg5[%c0_44, %c0_45] : memref<1x32xf32, #tpu.memory_space<vmem>>, vector<1x32xf32>
      %56 = arith.addf %54, %55 : vector<1x32xf32>
      %cst_46 = arith.constant 0.000000e+00 : f32
      %57 = vector.broadcast %cst_46 : f32 to vector<1x32xf32>
      %58 = arith.maximumf %56, %57 : vector<1x32xf32>
      %c0_47 = arith.constant 0 : index
      %c0_48 = arith.constant 0 : index
      %59 = vector.load %arg6[%c0_47, %c0_48] : memref<32x32xf32, #tpu.memory_space<vmem>>, vector<32x32xf32>
      %cst_49 = arith.constant dense<0.000000e+00> : vector<1x32xf32>
      %60 = tpu.matmul %58, %59, %cst_49 {dimension_numbers = #tpu.dot_dimension_numbers<[1], [0], [0], [1], [0, 0, 1, 1], [], []>} : vector<1x32xf32>, vector<32x32xf32>, vector<1x32xf32> -> vector<1x32xf32>
      %c0_50 = arith.constant 0 : index
      %c0_51 = arith.constant 0 : index
      %61 = vector.load %arg7[%c0_50, %c0_51] : memref<1x32xf32, #tpu.memory_space<vmem>>, vector<1x32xf32>
      %62 = arith.addf %60, %61 : vector<1x32xf32>
      %c0_52 = arith.constant 0 : index
      %c0_53 = arith.constant 0 : index
      %63 = vector.load %arg8[%c0_52, %c0_53] : memref<32x32xf32, #tpu.memory_space<vmem>>, vector<32x32xf32>
      %cst_54 = arith.constant dense<0.000000e+00> : vector<1x32xf32>
      %64 = tpu.matmul %62, %63, %cst_54 {dimension_numbers = #tpu.dot_dimension_numbers<[1], [0], [0], [1], [0, 0, 1, 1], [], []>} : vector<1x32xf32>, vector<32x32xf32>, vector<1x32xf32> -> vector<1x32xf32>
      %c0_55 = arith.constant 0 : index
      %c0_56 = arith.constant 0 : index
      %65 = vector.load %arg9[%c0_55, %c0_56] : memref<1x32xf32, #tpu.memory_space<vmem>>, vector<1x32xf32>
      %66 = arith.addf %64, %65 : vector<1x32xf32>
      %c0_57 = arith.constant 0 : index
      %c0_58 = arith.constant 0 : index
      %67 = vector.load %arg14[%c0_57, %c0_58] : memref<8x32xf32, #tpu.memory_space<vmem>>, vector<8x32xf32>
      %cst_59 = arith.constant 5.000000e-01 : f32
      %68 = vector.broadcast %cst_59 : f32 to vector<1x32xf32>
      %69 = arith.mulf %66, %68 : vector<1x32xf32>
      %70 = vector.broadcast %69 : vector<1x32xf32> to vector<8x32xf32>
      %71 = arith.mulf %67, %70 : vector<8x32xf32>
      %c0_60 = arith.constant 0 : index
      %c0_61 = arith.constant 0 : index
      %72 = vector.load %arg19[%c0_60, %c0_61] : memref<8x32xf32, #tpu.memory_space<vmem>>, vector<8x32xf32>
      tpu.vector_store %arg19[%c0_60, %c0_61], %71 {strides = array<i32>} : memref<8x32xf32, #tpu.memory_space<vmem>>, vector<8x32xf32>,
    } else {
    }
    %c0 = arith.constant 0 : index
    %c0_1 = arith.constant 0 : index
    %c0_2 = arith.constant 0 : index
    %3 = vector.load %arg3[%c0, %c0_1, %c0_2] : memref<1x32x256xf32, #tpu.memory_space<vmem>>, vector<1x32x256xf32>
    %4 = vector.shape_cast %3 : vector<1x32x256xf32> to vector<32x256xf32>
    %5 = arith.truncf %4 : vector<32x256xf32> to vector<32x256xbf16>
    %c0_3 = arith.constant 0 : index
    %c0_4 = arith.constant 0 : index
    %6 = vector.load %arg10[%c0_3, %c0_4] : memref<64x32xbf16, #tpu.memory_space<vmem>>, vector<64x32xbf16>
    %cst = arith.constant dense<0.000000e+00> : vector<64x256xf32>
    %7 = tpu.matmul %6, %5, %cst {dimension_numbers = #tpu.dot_dimension_numbers<[1], [0], [0], [1], [0, 0, 1, 1], [], []>} : vector<64x32xbf16>, vector<32x256xbf16>, vector<64x256xf32> -> vector<64x256xf32>
    %c0_5 = arith.constant 0 : index
    %c0_6 = arith.constant 0 : index
    %8 = vector.load %arg11[%c0_5, %c0_6] : memref<64x1xf32, #tpu.memory_space<vmem>>, vector<64x1xf32>
    %9 = vector.broadcast %8 : vector<64x1xf32> to vector<64x256xf32>
    %10 = arith.addf %7, %9 : vector<64x256xf32>
    %11 = vector.extract_strided_slice %10 {offsets = [0, 0], sizes = [32, 256], strides = [1, 1]} : vector<64x256xf32> to vector<32x256xf32>
    %12 = vector.extract_strided_slice %10 {offsets = [32, 0], sizes = [32, 256], strides = [1, 1]} : vector<64x256xf32> to vector<32x256xf32>
    %c0_7 = arith.constant 0 : index
    %c0_8 = arith.constant 0 : index
    %13 = vector.load %arg19[%c0_7, %c0_8] : memref<8x32xf32, #tpu.memory_space<vmem>>, vector<8x32xf32>
    %14 = arith.truncf %13 : vector<8x32xf32> to vector<8x32xbf16>
    %15 = arith.truncf %11 : vector<32x256xf32> to vector<32x256xbf16>
    %cst_9 = arith.constant dense<0.000000e+00> : vector<8x256xf32>
    %16 = tpu.matmul %14, %15, %cst_9 {dimension_numbers = #tpu.dot_dimension_numbers<[1], [0], [0], [1], [0, 0, 1, 1], [], []>} : vector<8x32xbf16>, vector<32x256xbf16>, vector<8x256xf32> -> vector<8x256xf32>
    %c0_10 = arith.constant 0 : index
    %c0_11 = arith.constant 0 : index
    %17 = vector.load %arg16[%c0_10, %c0_11] : memref<8x1xf32, #tpu.memory_space<vmem>>, vector<8x1xf32>
    %cst_12 = arith.constant dense<0xFF800000> : vector<8xf32>
    %18 = vector.multi_reduction <maximumf>, %16, %cst_12 [1] : vector<8x256xf32> to vector<8xf32>
    %19 = vector.shape_cast %18 : vector<8xf32> to vector<8x1xf32>
    %20 = arith.maximumf %17, %19 : vector<8x1xf32>
    %c0_13 = arith.constant 0 : index
    %c0_14 = arith.constant 0 : index
    %21 = vector.load %arg16[%c0_13, %c0_14] : memref<8x1xf32, #tpu.memory_space<vmem>>, vector<8x1xf32>
    %22 = arith.subf %21, %20 : vector<8x1xf32>
    %23 = math.exp %22 : vector<8x1xf32>
    %24 = vector.broadcast %20 : vector<8x1xf32> to vector<8x256xf32>
    %25 = arith.subf %16, %24 : vector<8x256xf32>
    %26 = math.exp %25 : vector<8x256xf32>
    %c0_15 = arith.constant 0 : index
    %c0_16 = arith.constant 0 : index
    %27 = vector.load %arg17[%c0_15, %c0_16] : memref<8x1xf32, #tpu.memory_space<vmem>>, vector<8x1xf32>
    %28 = arith.mulf %23, %27 : vector<8x1xf32>
    %cst_17 = arith.constant dense<0.000000e+00> : vector<8xf32>
    %29 = vector.multi_reduction <add>, %26, %cst_17 [1] : vector<8x256xf32> to vector<8xf32>
    %30 = vector.shape_cast %29 : vector<8xf32> to vector<8x1xf32>
    %31 = arith.addf %28, %30 : vector<8x1xf32>
    %c0_18 = arith.constant 0 : index
    %c0_19 = arith.constant 0 : index
    %32 = vector.load %arg17[%c0_18, %c0_19] : memref<8x1xf32, #tpu.memory_space<vmem>>, vector<8x1xf32>
    tpu.vector_store %arg17[%c0_18, %c0_19], %31 {strides = array<i32>} : memref<8x1xf32, #tpu.memory_space<vmem>>, vector<8x1xf32>,
    %c0_20 = arith.constant 0 : index
    %c0_21 = arith.constant 0 : index
    %33 = vector.load %arg18[%c0_20, %c0_21] : memref<8x32xf32, #tpu.memory_space<vmem>>, vector<8x32xf32>
    %34 = vector.broadcast %23 : vector<8x1xf32> to vector<8x32xf32>
    %35 = arith.mulf %34, %33 : vector<8x32xf32>
    %36 = arith.truncf %26 : vector<8x256xf32> to vector<8x256xbf16>
    %37 = arith.truncf %12 : vector<32x256xf32> to vector<32x256xbf16>
    %cst_22 = arith.constant dense<0.000000e+00> : vector<8x32xf32>
    %38 = tpu.matmul %36, %37, %cst_22 {dimension_numbers = #tpu.dot_dimension_numbers<[1], [1], [0], [0], [0, 0, 1, 0], [], []>} : vector<8x256xbf16>, vector<32x256xbf16>, vector<8x32xf32> -> vector<8x32xf32>
    %39 = arith.addf %35, %38 : vector<8x32xf32>
    %c0_23 = arith.constant 0 : index
    %c0_24 = arith.constant 0 : index
    %40 = vector.load %arg18[%c0_23, %c0_24] : memref<8x32xf32, #tpu.memory_space<vmem>>, vector<8x32xf32>
    tpu.vector_store %arg18[%c0_23, %c0_24], %39 {strides = array<i32>} : memref<8x32xf32, #tpu.memory_space<vmem>>, vector<8x32xf32>,
    %c0_25 = arith.constant 0 : index
    %c0_26 = arith.constant 0 : index
    %41 = vector.load %arg16[%c0_25, %c0_26] : memref<8x1xf32, #tpu.memory_space<vmem>>, vector<8x1xf32>
    tpu.vector_store %arg16[%c0_25, %c0_26], %20 {strides = array<i32>} : memref<8x1xf32, #tpu.memory_space<vmem>>, vector<8x1xf32>,
    %c0_i32_27 = arith.constant 0 : i32
    %42 = arith.cmpi eq, %arg1, %c0_i32_27 : i32
    %43 = arith.extui %42 : i1 to i32
    %c0_i32_28 = arith.constant 0 : i32
    %44 = arith.cmpi ne, %43, %c0_i32_28 : i32
    scf.if %44 {
      %c0_29 = arith.constant 0 : index
      %c0_30 = arith.constant 0 : index
      %45 = vector.load %arg17[%c0_29, %c0_30] : memref<8x1xf32, #tpu.memory_space<vmem>>, vector<8x1xf32>
      %46 = tpu.reciprocal %45 {approx = true} : vector<8x1xf32> -> vector<8x1xf32>
      %c0_31 = arith.constant 0 : index
      %c0_32 = arith.constant 0 : index
      %47 = vector.load %arg18[%c0_31, %c0_32] : memref<8x32xf32, #tpu.memory_space<vmem>>, vector<8x32xf32>
      %48 = vector.broadcast %46 : vector<8x1xf32> to vector<8x32xf32>
      %49 = arith.mulf %47, %48 : vector<8x32xf32>
      %c0_33 = arith.constant 0 : index
      %c0_34 = arith.constant 0 : index
      %50 = vector.load %arg14[%c0_33, %c0_34] : memref<8x32xf32, #tpu.memory_space<vmem>>, vector<8x32xf32>
      %51 = arith.mulf %49, %50 : vector<8x32xf32>
      %cst_35 = arith.constant dense<0.000000e+00> : vector<32xf32>
      %52 = vector.multi_reduction <add>, %51, %cst_35 [0] : vector<8x32xf32> to vector<32xf32>
      %53 = vector.shape_cast %52 : vector<32xf32> to vector<1x32xf32>
      %c0_36 = arith.constant 0 : index
      %c0_37 = arith.constant 0 : index
      %54 = vector.load %arg12[%c0_36, %c0_37] : memref<32x32xf32, #tpu.memory_space<vmem>>, vector<32x32xf32>
      %cst_38 = arith.constant dense<0.000000e+00> : vector<1x32xf32>
      %55 = tpu.matmul %53, %54, %cst_38 {dimension_numbers = #tpu.dot_dimension_numbers<[1], [0], [0], [1], [0, 0, 1, 1], [], []>} : vector<1x32xf32>, vector<32x32xf32>, vector<1x32xf32> -> vector<1x32xf32>
      %c0_39 = arith.constant 0 : index
      %c0_40 = arith.constant 0 : index
      %56 = vector.load %arg13[%c0_39, %c0_40] : memref<1x32xf32, #tpu.memory_space<vmem>>, vector<1x32xf32>
      %57 = arith.addf %55, %56 : vector<1x32xf32>
      %c0_41 = arith.constant 0 : index
      %c0_42 = arith.constant 0 : index
      %c0_43 = arith.constant 0 : index
      %58 = vector.load %arg15[%c0_41, %c0_42, %c0_43] : memref<1x1x32xf32, #tpu.memory_space<vmem>>, vector<1x1x32xf32>
      %59 = vector.shape_cast %58 : vector<1x1x32xf32> to vector<1x32xf32>
      %60 = vector.shape_cast %57 : vector<1x32xf32> to vector<1x1x32xf32>
      tpu.vector_store %arg15[%c0_41, %c0_42, %c0_43], %60 {strides = array<i32>} : memref<1x1x32xf32, #tpu.memory_space<vmem>>, vector<1x1x32xf32>,
    } else {
    }
    return
  }
  func.func @transform_0(%arg0: i32, %arg1: i32) -> (i32, i32, i32) {
    %c0_i32 = arith.constant 0 : i32
    %c0_i32_0 = arith.constant 0 : i32
    %c0_i32_1 = arith.constant 0 : i32
    return %arg0, %c0_i32, %c0_i32_0 : i32, i32, i32
  }
  func.func @transform_1(%arg0: i32, %arg1: i32) -> (i32, i32, i32) {
    %c0_i32 = arith.constant 0 : i32
    %c0_i32_0 = arith.constant 0 : i32
    return %arg0, %c0_i32, %arg1 : i32, i32, i32
  }
  func.func @transform_2(%arg0: i32, %arg1: i32) -> (i32, i32) {
    %c0_i32 = arith.constant 0 : i32
    %c0_i32_0 = arith.constant 0 : i32
    %c0_i32_1 = arith.constant 0 : i32
    return %c0_i32, %c0_i32_0 : i32, i32
  }
  func.func @transform_3(%arg0: i32, %arg1: i32) -> (i32, i32) {
    %c0_i32 = arith.constant 0 : i32
    %c0_i32_0 = arith.constant 0 : i32
    %c0_i32_1 = arith.constant 0 : i32
    return %c0_i32, %c0_i32_0 : i32, i32
  }
  func.func @transform_4(%arg0: i32, %arg1: i32) -> (i32, i32) {
    %c0_i32 = arith.constant 0 : i32
    %c0_i32_0 = arith.constant 0 : i32
    %c0_i32_1 = arith.constant 0 : i32
    return %c0_i32, %c0_i32_0 : i32, i32
  }
  func.func @transform_5(%arg0: i32, %arg1: i32) -> (i32, i32) {
    %c0_i32 = arith.constant 0 : i32
    %c0_i32_0 = arith.constant 0 : i32
    %c0_i32_1 = arith.constant 0 : i32
    return %c0_i32, %c0_i32_0 : i32, i32
  }
  func.func @transform_6(%arg0: i32, %arg1: i32) -> (i32, i32) {
    %c0_i32 = arith.constant 0 : i32
    %c0_i32_0 = arith.constant 0 : i32
    %c0_i32_1 = arith.constant 0 : i32
    return %c0_i32, %c0_i32_0 : i32, i32
  }
  func.func @transform_7(%arg0: i32, %arg1: i32) -> (i32, i32) {
    %c0_i32 = arith.constant 0 : i32
    %c0_i32_0 = arith.constant 0 : i32
    %c0_i32_1 = arith.constant 0 : i32
    return %c0_i32, %c0_i32_0 : i32, i32
  }
  func.func @transform_8(%arg0: i32, %arg1: i32) -> (i32, i32) {
    %c0_i32 = arith.constant 0 : i32
    %c0_i32_0 = arith.constant 0 : i32
    %c0_i32_1 = arith.constant 0 : i32
    return %c0_i32, %c0_i32_0 : i32, i32
  }
  func.func @transform_9(%arg0: i32, %arg1: i32) -> (i32, i32) {
    %c0_i32 = arith.constant 0 : i32
    %c0_i32_0 = arith.constant 0 : i32
    %c0_i32_1 = arith.constant 0 : i32
    return %c0_i32, %c0_i32_0 : i32, i32
  }
  func.func @transform_10(%arg0: i32, %arg1: i32) -> (i32, i32) {
    %c0_i32 = arith.constant 0 : i32
    %c0_i32_0 = arith.constant 0 : i32
    %c0_i32_1 = arith.constant 0 : i32
    return %c0_i32, %c0_i32_0 : i32, i32
  }
  func.func @transform_11(%arg0: i32, %arg1: i32) -> (i32, i32) {
    %c0_i32 = arith.constant 0 : i32
    %c0_i32_0 = arith.constant 0 : i32
    %c0_i32_1 = arith.constant 0 : i32
    return %c0_i32, %c0_i32_0 : i32, i32
  }
  func.func @transform_12(%arg0: i32, %arg1: i32) -> (i32, i32) {
    %c0_i32 = arith.constant 0 : i32
    %c0_i32_0 = arith.constant 0 : i32
    %c0_i32_1 = arith.constant 0 : i32
    return %c0_i32, %c0_i32_0 : i32, i32
  }
  func.func @transform_13(%arg0: i32, %arg1: i32) -> (i32, i32, i32) {
    %c0_i32 = arith.constant 0 : i32
    %c0_i32_0 = arith.constant 0 : i32
    %c0_i32_1 = arith.constant 0 : i32
    return %arg0, %c0_i32, %c0_i32_0 : i32, i32, i32
  }
}

</mosaic_0001>

<bundles_post_ra>
// kernel: tpu_custom_call.1
= control target key start
LH: loop header
LB: loop body
LE: loop exit
PB: predicated region body
PF: predicated region fallthrough
CT: control target
= control target key end

     0   :  { %s2234_s0 = inlined_call_operand.vmem [shape: f32[2,1,64], index: 0, kind: input, shape index: {}]   ;;  %s2235_s1 = inlined_call_operand.vmem [shape: f32[2,32,256], index: 1, kind: input, shape index: {}]   ;;  %s2236_s2 = inlined_call_operand.vmem [shape: f32[64,32], index: 2, kind: input, shape index: {}]   ;;  %s2237_s3 = inlined_call_operand.hbm [shape: f32[1,32], index: 3, kind: input, shape index: {}]   ;;  %s2238_s4 = inlined_call_operand.vmem [shape: f32[32,32], index: 4, kind: input, shape index: {}]   ;;  %s2239_s5 = inlined_call_operand.hbm [shape: f32[1,32], index: 5, kind: input, shape index: {}]   ;;  %s2240_s6 = inlined_call_operand.vmem [shape: f32[32,32], index: 6, kind: input, shape index: {}]   ;;  %s2241_s7 = inlined_call_operand.hbm [shape: f32[1,32], index: 7, kind: input, shape index: {}]   ;;  %s2242_s8 = inlined_call_operand.vmem [shape: bf16[64,32], index: 8, kind: input, shape index: {}]   ;;  %s2243_s9 = inlined_call_operand.vmem [shape: f32[64,1], index: 9, kind: input, shape index: {}]   ;;  %s2244_s10 = inlined_call_operand.hbm [shape: f32[32,32], index: 10, kind: input, shape index: {}]   ;;  %s2245_s11 = inlined_call_operand.vmem [shape: f32[1,32], index: 11, kind: input, shape index: {}]   ;;  %s2246_s12 = inlined_call_operand.vmem [shape: f32[8,32], index: 12, kind: input, shape index: {}]   ;;  %s2247_s13 = inlined_call_operand.hbm [shape: f32[2,1,32], index: 13, kind: output, shape index: {}]  }
   0x1   :  { %2260 = sst [smem:[#allocation26_spill]] %s2239_s5 }
   0x2   :  { %2261 = sst [smem:[#allocation27_spill]] %s2245_s11 }
   0x3   :  { %2262 = sst [smem:[#allocation28_spill]] %s2247_s13 }
   0x4   :  { %18 = vsyncpa [#allocation7], 0 }
   0x5   :  { %19 = vsyncpa [#allocation10], 0 }
   0x6   :  { %20 = vsyncpa [#allocation13], 0 }
   0x7   :  { %21 = vsyncpa [#allocation8], 0 }
   0x8   :  { %23 = vsyncpa [#allocation8 + $0x1], 0  ;;  %s1873_s25 = smov 0   ;;  %s1875_s26 = smov 0  }
   0x9   :  { %s1877_s27 = smov 0   ;;  %s1879_s28 = smov 0  }
   0xa   :  { %s1881_s29 = smov 0   ;;  %s1883_s30 = smov 0  }
   0xb LB: > { %2263 = sst [smem:[#allocation19_spill]] %s1769_s25  ;;  %s1332_s14 = sadd.s32 4294967295, %s1789_s30   ;;  %s1789_s30 = sphi %s1883_s30, %s29_s30   ;;  %s1785_s29 = sphi %s1881_s29, %s2290_s29   ;;  %s1781_s28 = sphi %s1879_s28, %s2293_s28   ;;  %s1777_s27 = sphi %s1877_s27, %s2288_s27   ;;  %s1773_s26 = sphi %s1875_s26, %s2292_s26   ;;  %s1769_s25 = sphi %s1873_s25, %s2291_s25  }
   0xc   : > { %2264 = sst [smem:[#allocation20_spill]] %s1777_s27  ;;  %s1333_s15 = sadd.s32 4294967294, %s1789_s30  }
   0xd   : > { %2265 = sst [smem:[#allocation21_spill]] %s1785_s29  ;;  %s41_s16 = sadd.s32 1, %s1785_s29 }
   0xe   : > { %2266 = sst [smem:[#allocation22_spill]] %s1789_s30  ;;  %s333_s17 = sadd.s32 1, %s1777_s27 }
   0xf   : > { %p43_p0 = scmp.ge.s32.totalorder %s41_s16, 2  ;;  %p343_p1 = scmp.ne.s32.totalorder %s1777_s27, %s1773_s26 }
  0x10   : > { %p344_p2 = scmp.eq.s32.totalorder %s1332_s14, 1  ;;  %p349_p3 = scmp.ne.s32.totalorder %s1773_s26, %s1769_s25 }
  0x11   : > { %s2295_s16 = smov (%p43_p0, %s41_s16), 0  ;;  %p350_p5 = scmp.eq.s32.totalorder %s1333_s15, 1 }
  0x12   : > { %2267 = sst [smem:[#allocation23_spill]] %s2295_s16  ;;  %p1913_p4 = por %p344_p2, %p343_p1 }
  0x13   : > { %s330_s19 = ssub.s32 %s1785_s29, %s2295_s16  ;;  %p1334_p6 = scmp.ge.s32.totalorder %s1789_s30, 1 }
  0x14   : > { %s2268_s18 = scalar_select %p1913_p4, 1, 0 }
  0x15   : > { %p331_p7 = scmp.eq.s32.totalorder %s330_s19, 0  ;;  %p1920_p8 = por %p350_p5, %p349_p3 }
  0x16   : > { %p357_p9 = scmp.lt.s32.totalorder %s1789_s30, 3  ;;  %p1932_p11 = scmp.eq.s32.totalorder %s1332_s14, 0 }
  0x17   : > { %s2269_s20 = scalar_select %p1920_p8, 1, 0 }
  0x18   : > { %s1926_s21 = scalar_select %p331_p7, %s1777_s27, %s333_s17  }
  0x19   : > { %2270 = sst [smem:[#allocation24_spill]] %s2269_s20  ;;  %p1928_p10 = pnand %p1334_p6, %p357_p9 }
  0x1a   : > { %2271 = sst [smem:[#allocation25_spill]] %s1926_s21  ;;  %s1791_s24 = smov [#allocation9]  }
  0x1b   : > { %s2272_s22 = scalar_select %p1928_p10, 1, 0 }
  0x1c   : > { %s2273_s23 = scalar_select %p1932_p11, 1, 0 }
  0x1d   : > { %p1488_p12 = pneg %p1928_p10  ;;  %s387_s15 = sshll.u32 %s1791_s24, 4  ;;  %s388_s15 = int_to_ptr.vmem [resolvable:$true] %s387_s15 }
  0x1e   : > { %s1792_s17 = smov [#allocation6]   ;;  %s2275_s5 = sld [smem:[#allocation26_spill]] }
  0x1f   : > { %p1940_p13 = pnand %p1932_p11, %p1488_p12  ;;  %s373_s16 = sshll.u32 %s1792_s17, 4  ;;  %s1944_s16 = int_to_ptr.vmem [resolvable:$true] %s373_s16 }
  0x21   : > { %p1954_p1 = pneg %p1940_p13 }
  0x24   : > { %s1587_s21 = scalar_lea.hbm %s2275_s5, 16 }
  0x25   : > { %p1588_p0 = scmp.ne.s32.totalorder %s2275_s5, %s1587_s21  ;;  %p1594_p5 = scmp.lt.u32.totalorder %s1587_s21, %s2275_s5 }
  0x27   : > { %p1590_p2 = pnand %p1954_p1, %p1588_p0 }
  0x29   : > { %p1591_p3 = pneg %p1590_p2 }
  0x2b   : > { %p1596_p6 = pnand %p1594_p5, %p1591_p3 }
  0x2d   : > { %1599 = shalt.err (!%p1596_p6)
}
  0x2e   : > { %s1600_s29 = scalar_lea.vmem %s388_s15, 16  ;;  %s1607_s27 = scalar_lea.vmem %s388_s15, 32 }
  0x2f   : > { %p1601_p7 = scmp.ne.s32.totalorder %s388_s15, %s1600_s29  ;;  %p1608_p8 = scmp.lt.s32.totalorder %s388_s15, %s388_s15 }
  0x30   : > { %p1609_p4 = scmp.lt.s32.totalorder %s1607_s27, %s1600_s29 }
  0x31   : > { %p1603_p9 = pnand %p1601_p7, %p1954_p1 }
  0x32   : > { %p1610_p11 = por %p1609_p4, %p1608_p8 }
  0x33   : > { %p1604_p12 = pneg %p1603_p9 }
  0x35   : > { %p1611_p10 = pnand %p1610_p11, %p1604_p12 }
  0x37   : > { %1614 = shalt.err (!%p1611_p10)
}
  0x38   : > { %1494 = dma.hbm_to_vmem [thread:$0]  (!%p1940_p13), %s2275_s5, 16, %s388_s15, [#allocation10]  }
  0x39   : > { %s1615_s17 = scalar_lea.hbm %s2237_s3, 16 }
  0x3a   : > { %p1616_p0 = scmp.ne.s32.totalorder %s2237_s3, %s1615_s17  ;;  %p1622_p8 = scmp.lt.u32.totalorder %s1615_s17, %s2237_s3 }
  0x3c   : > { %p1618_p2 = pnand %p1616_p0, %p1954_p1 }
  0x3e   : > { %p1619_p4 = pneg %p1618_p2 }
  0x40   : > { %p1624_p10 = pnand %p1622_p8, %p1619_p4 }
  0x42   : > { %1627 = shalt.err (!%p1624_p10)
}
  0x43   : > { %s1628_s15 = scalar_lea.vmem %s1944_s16, 16  ;;  %s1635_s13 = scalar_lea.vmem %s1944_s16, 32 }
  0x44   : > { %p1629_p11 = scmp.ne.s32.totalorder %s1944_s16, %s1628_s15  ;;  %p1636_p6 = scmp.lt.s32.totalorder %s1944_s16, %s1944_s16 }
  0x45   : > { %p1637_p7 = scmp.lt.s32.totalorder %s1635_s13, %s1628_s15 }
  0x46   : > { %p1631_p3 = pnand %p1629_p11, %p1954_p1 }
  0x47   : > { %p1638_p9 = por %p1637_p7, %p1636_p6 }
  0x48   : > { %p1632_p5 = pneg %p1631_p3 }
  0x4a   : > { %p1639_p12 = pnand %p1638_p9, %p1632_p5 }
  0x4c   : > { %1642 = shalt.err (!%p1639_p12)
}
  0x4d   : > { %1491 = dma.hbm_to_vmem [thread:$0]  (!%p1940_p13), %s2237_s3, 16, %s1944_s16, [#allocation7]  }
  0x4e   : > { %s1793_s14 = smov [#allocation11]   ;;  %s1794_s21 = smov [#allocation12]  }
  0x4f   : > { %s401_s25 = sshll.u32 %s1793_s14, 4  ;;  %s417_s17 = sshll.u32 %s1794_s21, 4  ;;  %s402_s25 = int_to_ptr.vmem [resolvable:$true] %s401_s25  ;;  %s418_s17 = int_to_ptr.vmem [resolvable:$true] %s417_s17 }
  0x50   : > { %s1643_s15 = scalar_lea.hbm %s2241_s7, 16 }
  0x51   : > { %p1644_p0 = scmp.ne.s32.totalorder %s2241_s7, %s1643_s15  ;;  %p1650_p8 = scmp.lt.u32.totalorder %s1643_s15, %s2241_s7 }
  0x53   : > { %p1646_p2 = pnand %p1644_p0, %p1954_p1 }
  0x55   : > { %p1647_p4 = pneg %p1646_p2 }
  0x57   : > { %p1652_p10 = pnand %p1650_p8, %p1647_p4 }
  0x59   : > { %1655 = shalt.err (!%p1652_p10)
}
  0x5a   : > { %s1656_s16 = scalar_lea.vmem %s402_s25, 16  ;;  %s1663_s20 = scalar_lea.vmem %s402_s25, 32 }
  0x5b   : > { %p1657_p11 = scmp.ne.s32.totalorder %s402_s25, %s1656_s16  ;;  %p1664_p6 = scmp.lt.s32.totalorder %s402_s25, %s402_s25 }
  0x5c   : > { %p1665_p7 = scmp.lt.s32.totalorder %s1663_s20, %s1656_s16 }
  0x5d   : > { %p1659_p3 = pnand %p1657_p11, %p1954_p1 }
  0x5e   : > { %p1666_p9 = por %p1665_p7, %p1664_p6 }
  0x5f   : > { %p1660_p5 = pneg %p1659_p3 }
  0x61   : > { %p1667_p12 = pnand %p1666_p9, %p1660_p5 }
  0x63   : > { %1670 = shalt.err (!%p1667_p12)
}
  0x64   : > { %1497 = dma.hbm_to_vmem [thread:$0]  (!%p1940_p13), %s2241_s7, 16, %s402_s25, [#allocation10]  }
  0x65   : > { %s1671_s29 = scalar_lea.hbm %s2244_s10, 512 }
  0x66   : > { %p1672_p0 = scmp.ne.s32.totalorder %s2244_s10, %s1671_s29  ;;  %p1678_p8 = scmp.lt.u32.totalorder %s1671_s29, %s2244_s10 }
  0x68   : > { %p1674_p2 = pnand %p1672_p0, %p1954_p1 }
  0x6a   : > { %p1675_p4 = pneg %p1674_p2 }
  0x6c   : > { %p1680_p10 = pnand %p1678_p8, %p1675_p4 }
  0x6e   : > { %1683 = shalt.err (!%p1680_p10)
}
  0x6f   : > { %s1684_s16 = scalar_lea.vmem %s418_s17, 512  ;;  %p1692_p6 = scmp.lt.s32.totalorder %s418_s17, %s418_s17 }
  0x70   : > { %p1685_p11 = scmp.ne.s32.totalorder %s418_s17, %s1684_s16  ;;  %p1693_p7 = scmp.lt.s32.totalorder %s1684_s16, %s1684_s16 }
  0x72   : > { %p1687_p3 = pnand %p1685_p11, %p1954_p1  ;;  %p1694_p9 = por %p1693_p7, %p1692_p6 }
  0x74   : > { %p1688_p5 = pneg %p1687_p3 }
  0x76   : > { %p1695_p12 = pnand %p1694_p9, %p1688_p5 }
  0x78   : > { %1698 = shalt.err (!%p1695_p12)
}
  0x79   : > { %s1795_s25 = smov 128   ;;  %s1796_s20 = smov 8  }
  0x7a   : > { %1500 = dma.hbm_to_vmem [thread:$0]  (!%p1940_p13), %s2244_s10, 512, %s418_s17, [#allocation13], %s1795_s25, %s1795_s25, %s1796_s20  }
  0x7b   : > { %p2277_p0 = scmp.ne.s32.totalorder %s2272_s22, 0 }
  0x7c   : > { %p2278_p2 = scmp.ne.s32.totalorder (!%p2277_p0), %s2273_s23, 0 }
  0x7d   : > { %458 = sbr.rel (%p2277_p0) target bundleno = 1857 (0x741), region = 72 }
  0x84   : > { %1752 = dma.done.wait (%p2278_p2), [#allocation7], 16  }
  0x85   : > { %1754 = vsyncadd (%p2278_p2), [#allocation7], 4294967280 }
  0x86   : > { %1756 = dma.done.wait (%p2278_p2), [#allocation10], 32  }
  0x87   : > { %1758 = vsyncadd (%p2278_p2), [#allocation10], 4294967264 }
  0x88   : > { %1760 = dma.done.wait (%p2278_p2), [#allocation13], 512  }
  0x89   : > { %1762 = vsyncadd (%p2278_p2), [#allocation13], 4294966784  ;;  %vm541_vm0 = vcmask 261120   ;;  %v1797_v0 = vmov 0.0|0.0   ;;  %v1798_v1 = vmov 0.0   ;;  %vm1799_vm1 = vmmov 0  }
  0x8a   : > { %1440 = vmatprep.subr.bf16.mxu0 %v1797_v0  ;;  %542 = vst.msk [vmem:[#allocation4] sm:$0xff] %vm541_vm0, %v1798_v1  ;;  %1404 = vmatprep.mubr.msk.f32.mxu0 %vm1799_vm1, %v1798_v1  ;;  %v544_v2 = vld [vmem:[%s2236_s2] sm:$0xff]  ;;  %v545_v3 = vld [vmem:[%s2236_s2 + $0x8] sm:$0xff]  ;;  %v546_v4 = vld [vmem:[%s2236_s2 + $0x10] sm:$0xff]  ;;  %p520_p13 = scmp.lt.s32.totalorder %s1781_s28, 1  ;;  %vm553_vm2 = vcmask 523264  }
  0x8b   : > { %1452 = vmatprep.subr.bf16.mxu1 %v1797_v0  ;;  %1415 = vmatprep.mubr.msk.f32.mxu1 %vm1799_vm1, %v1798_v1  ;;  %v1441_v5 = vpack.c.bf16 %v545_v3, %v544_v2  ;;  %v547_v6 = vld [vmem:[%s2236_s2 + $0x18] sm:$0xff]  ;;  %v548_v7 = vld [vmem:[%s2236_s2 + $0x20] sm:$0xff]  ;;  %v549_v9 = vld [vmem:[%s2236_s2 + $0x28] sm:$0xff]  ;;  %v1800_v28 = vmov 0   ;;  %vm538_vm3 = vcmask 7168   ;;  %s518_s5 = sand.u32 1, %s1773_s26  }
  0x8c   : > { %v1444_v8 = vpack.c.bf16 %v547_v6, %v546_v4  ;;  %v628_v10 = vld [vmem:[%s2238_s4] sm:$0xff]  ;;  %v629_v11 = vld [vmem:[%s2238_s4 + $0x8] sm:$0xff]  ;;  %v1447_v13 = vpack.c.bf16 %v549_v9, %v548_v7  ;;  %v550_v14 = vld [vmem:[%s2236_s2 + $0x30] sm:$0xff]  ;;  %s521_s24 = scalar_select %p520_p13, %s1781_s28, 1  ;;  %1574 = vset.pattern.permute.xlu1 %v1800_v28  ;;  %1573 = vset.pattern.permute.xlu0 %v1800_v28  ;;  %540 = vst.msk [vmem:[#allocation3] sm:$0xff] %vm538_vm3, %v1798_v1  ;;  %vm1198_vm4 = vcmask 253952  }
  0x8d   : > { %1442 = vmatpush3.bf16.msra.mxu0 %v1441_v5  ;;  %v1453_v12 = vpack.c.bf16 %v629_v11, %v628_v10  ;;  %v551_v15 = vld [vmem:[%s2236_s2 + $0x38] sm:$0xff]  ;;  %v630_v18 = vld [vmem:[%s2238_s4 + $0x10] sm:$0xff]  ;;  %v1575_v34 = vld [vmem:[%s2242_s8] sm:$0xff]   ;;  %s2279_s23 = sld [smem:[#allocation27_spill]]  ;;  %s1360_s19 = sshll.u32 %s1781_s28, 4 }
  0x8e   : > { %1443 = vmatprep.subr.bf16.mxu0 %v1797_v0  ;;  %v1450_v16 = vpack.c.bf16 %v551_v15, %v550_v14  ;;  %s522_s21 = scalar_lea.vmem %s2234_s0, %s521_s24  ;;  %s1363_s29 = sshll.u32 %s521_s24, 6  ;;  %v631_v19 = vld [vmem:[%s2238_s4 + $0x18] sm:$0xff]  ;;  %v1576_v35 = vld [vmem:[%s2242_s8 + $0x8] sm:$0xff]   ;;  %v552_v36 = vld [vmem:[#allocation6] sm:$0x1] }
  0x8f   : > { %1454 = vmatpush3.bf16.msra.mxu1 %v1453_v12  ;;  %v543_v17 = vld [vmem:[%s522_s21] sm:$0x1]  ;;  %v1456_v20 = vpack.c.bf16 %v631_v19, %v630_v18  ;;  %s531_s20 = scalar_lea.vmem %s2235_s1, %s1363_s29  ;;  %v707_v38 = vld [vmem:[%s2240_s6 + $0x8] sm:$0xff]  ;;  %v708_v44 = vld [vmem:[%s2240_s6 + $0x10] sm:$0xff]  ;;  %s519_s24 = scalar_lea.vmem [#allocation14], %s518_s5 }
  0x90   : > { %1455 = vmatprep.subr.bf16.mxu1 %v1797_v0  ;;  %v793_v21 = vld [vmem:[%s531_s20 + $0x8] sm:$0xff]  ;;  %v795_v22 = vld [vmem:[%s531_s20 + $0x18] sm:$0xff]  ;;  %v792_v23 = vld [vmem:[%s531_s20] sm:$0xff]  ;;  %s1213_s17 = sshll.u32 %s519_s24, 4  ;;  %s2280_s29 = sld [smem:[#allocation28_spill]]  ;;  %s2189_s17 = int_to_ptr.vmem [resolvable:$true] %s1213_s17 }
  0x91   : > { %1445 = vmatpush3.bf16.msra.mxu0 %v1444_v8  ;;  %v801_v24 = vpack.c.bf16 %v795_v22, %v793_v21  ;;  %v794_v25 = vld [vmem:[%s531_s20 + $0x10] sm:$0xff]  ;;  %v797_v26 = vld [vmem:[%s531_s20 + $0x28] sm:$0xff]  ;;  %v799_v27 = vld [vmem:[%s531_s20 + $0x38] sm:$0xff]  ;;  %s1201_s13 = scalar_lea.sflag [#allocation8], %s518_s5  ;;  %s1699_s30 = scalar_lea.vmem %s2189_s17, 16 }
  0x92   : > { %1446 = vmatprep.subr.bf16.mxu0 %v1797_v0  ;;  %v800_v29 = vpack.c.bf16 %v794_v25, %v792_v23  ;;  %v803_v30 = vpack.c.bf16 %v799_v27, %v797_v26  ;;  %v796_v31 = vld [vmem:[%s531_s20 + $0x20] sm:$0xff]  ;;  %v798_v32 = vld [vmem:[%s531_s20 + $0x30] sm:$0xff]  ;;  %v709_v45 = vld [vmem:[%s2240_s6 + $0x18] sm:$0xff]  ;;  %p1700_p1 = scmp.ne.s32.totalorder %s2189_s17, %s1699_s30  ;;  %p2282_p4 = scmp.ne.s32.totalorder %s2268_s18, 0 }
  0x93   : > { %1457 = vmatpush3.bf16.msra.mxu1 %v1456_v20  ;;  %v802_v33 = vpack.c.bf16 %v798_v32, %v796_v31  ;;  %v706_v37 = vld [vmem:[%s2240_s6] sm:$0xff]  ;;  %v1462_v46 = vpack.c.bf16 %v709_v45, %v708_v44  ;;  %v1577_v47 = vld [vmem:[%s2242_s8 + $0x10] sm:$0xff]   ;;  %v815_v50 = vld [vmem:[%s2243_s9 + $0x18] sm:$0xff]  ;;  %v786_v32 = vlaneseq  ;;  %s1802_s28 = smov [#allocation14]  }
  0x94   : > { %1458 = vmatprep.subr.bf16.mxu1 %v1797_v0  ;;  %v1459_v42 = vpack.c.bf16 %v707_v38, %v706_v37  ;;  %v814_v48 = vld [vmem:[%s2243_s9 + $0x10] sm:$0xff]  ;;  %v812_v49 = vld [vmem:[%s2243_s9] sm:$0xff]  ;;  %v813_v51 = vld [vmem:[%s2243_s9 + $0x8] sm:$0xff]  ;;  %p1701_p8 = pnand %p1700_p1, %p2282_p4  ;;  %s1703_s16 = sshll.u32 %s1802_s28, 4  ;;  %s1704_s16 = int_to_ptr.vmem [resolvable:$false] %s1703_s16 }
  0x95   : > { %1448 = vmatpush3.bf16.msra.mxu0 %v1447_v13  ;;  %832 = vperm.xlu1 %1574, %v814_v48   ;;  %v816_v52 = vld [vmem:[%s2243_s9 + $0x20] sm:$0xff]  ;;  %v817_v55 = vld [vmem:[%s2243_s9 + $0x28] sm:$0xff]  ;;  %v1578_v45 = vld [vmem:[%s2242_s8 + $0x18] sm:$0xff]   ;;  %s1705_s25 = scalar_lea.vmem %s1704_s16, 32  ;;  %p1706_p11 = scmp.lt.s32.totalorder %s2189_s17, %s1704_s16 }
  0x96   : > { %1449 = vmatprep.subr.bf16.mxu0 %v1797_v0  ;;  %822 = vperm.xlu0 %1573, %v812_v49   ;;  %v632_v59 = vld [vmem:[#allocation9] sm:$0x1]  ;;  %s2281_s15 = smov %s2280_s29  ;;  %s2187_s27 = scalar_lea.hbm %s2280_s29, %s1360_s19 }
  0x97   : > { %p1702_p10 = pneg %p1701_p8  ;;  %p1707_p3 = scmp.lt.s32.totalorder %s1705_s25, %s1699_s30 }
  0x99   : > { %1451 = vmatpush3.bf16.msra.mxu0 %v1450_v16  ;;  %837 = vperm.xlu1 %1574, %v815_v50   ;;  %p1708_p5 = por %p1707_p3, %p1706_p11 }
  0x9a   : > { %893 = vmatprep.subr.bf16.mxu0 %v801_v24  ;;  %827 = vperm.xlu0 %1573, %v813_v51  }
  0x9b   : > { %p1709_p6 = pnand %p1708_p5, %p1702_p10 }
  0x9c   : > { %1405 = vmatmul.mubr.msk.f32.vlgmr.msra.gmra.mrb[0].mxu0 %vm553_vm2, %v543_v17 }
  0x9d   : > { %925 = vmatprep.mubr.bf16.mxu0 %v1800_v28  ;;  %894 = vmatpush1.bf16.msra.mxu0 %v800_v29 }
  0x9e   : > { %895 = vmatprep.subr.bf16.mxu0 %v803_v30  ;;  %842 = vperm.xlu1 %1574, %v816_v52  }
  0xa1   : > { %896 = vmatpush1.bf16.msra.mxu0 %v802_v33  ;;  %v787_v33 = vshrl.u32 %v786_v32, 7 }
  0xa2   : > { %847 = vperm.xlu1 %1574, %v817_v55  }
  0xa3   : > { %v788_v37 = vsub.s32 0, %v787_v33 }
  0xa4   : > { %1354 = vmatmul.mubr.msk.bf16.vlgmr.msra.gmra.mrb[4].mxu0 %vm541_vm0, %v1575_v34  ;;  %v710_v34 = vld [vmem:[#allocation11] sm:$0x1] }
  0xa5   : > { %935 = vmatprep.mubr.bf16.mxu0 %v1800_v28 }
  0xac   : > { %1355 = vmatmul.mubr.msk.bf16.gmra.mrb[8].mxu0 %vm541_vm0, %v1576_v35 }
  0xad   : > { %945 = vmatprep.mubr.bf16.mxu0 %v1800_v28 }
  0xb4   : > { %1356 = vmatmul.mubr.msk.bf16.gmra.mrb[12].mxu0 %vm541_vm0, %v1577_v47 }
  0xb5   : > { %955 = vmatprep.mubr.bf16.mxu0 %v1800_v28 }
  0xbc   : > { %1357 = vmatmul.mubr.msk.bf16.gmra.mrb[16].mxu0 %vm541_vm0, %v1578_v45 }
 0x114   : > { %v833_v9 = vpop.permute.xlu1 %832 }
 0x115   : > { %v823_v63 = vpop.permute.xlu0 %822 }
 0x118   : > { %v838_v10 = vpop.permute.xlu1 %837 }
 0x119   : > { %v828_v4 = vpop.permute.xlu0 %827 }
 0x11d   : > { %v843_v13 = vpop.permute.xlu1 %842 }
 0x121   : > { %v848_v22 = vpop.permute.xlu1 %847 }
 0x16f   : > { %v623_v39 = vpop.f32.mrb[0].mxu0 }
 0x170   : > { %v624_v40 = vadd.f32 %v623_v39, %v552_v36  ;;  %v1406_v41 = vpop.f32.mrb[1].mxu0 }
 0x172   : > { %v627_v43 = vmax.f32 %v624_v40, 0.0  ;;  %v2151_v40 = vld [vmem:[%s2246_s12] sm:$0xff] }
 0x174   : > { %1416 = vmatmul.mubr.msk.f32.vlgmr.msra.gmra.mrb[0].mxu1 %vm541_vm0, %v627_v43 }
 0x175   : > { %1460 = vmatpush3.bf16.msra.mxu1 %v1459_v42  ;;  %1426 = vmatprep.mubr.msk.f32.mxu1 %vm1799_vm1, %v1798_v1 }
 0x176   : > { %1461 = vmatprep.subr.bf16.mxu1 %v1797_v0 }
 0x177   : > { %v927_v53 = vpop.f32.mrb[4].mxu0 }
 0x178   : > { %v929_v54 = vpop.f32.mrb[5].mxu0  ;;  %v928_v2 = vadd.f32 %v927_v53, %v823_v63 }
 0x179   : > { %1463 = vmatpush3.bf16.msra.mxu1 %v1462_v46  ;;  %v931_v56 = vpop.f32.mrb[6].mxu0  ;;  %v930_v3 = vadd.f32 %v929_v54, %v823_v63  ;;  %v1801_v46 = vmov -inf  }
 0x17a   : > { %v933_v57 = vpop.f32.mrb[7].mxu0  ;;  %v932_v5 = vadd.f32 %v931_v56, %v828_v4  ;;  %539 = vst.msk [vmem:[#allocation2] sm:$0xff] %vm538_vm3, %v1801_v46  ;;  %v818_v56 = vld [vmem:[%s2243_s9 + $0x30] sm:$0xff] }
 0x17b   : > { %v934_v6 = vadd.f32 %v933_v57, %v828_v4 }
 0x17c   : > { %v968_v7 = vpack.c.bf16 %v932_v5, %v928_v2 }
 0x17d   : > { %v969_v8 = vpack.c.bf16 %v934_v6, %v930_v3 }
 0x17f   : > { %v937_v58 = vpop.f32.mrb[8].mxu0  ;;  %975 = vmatprep.subr.bf16.mxu1 %v969_v8 }
 0x180   : > { %v939_v11 = vpop.f32.mrb[9].mxu0  ;;  %v938_v16 = vadd.f32 %v937_v58, %v833_v9 }
 0x181   : > { %v941_v12 = vpop.f32.mrb[10].mxu0  ;;  %v940_v18 = vadd.f32 %v939_v11, %v833_v9  ;;  %v1016_v52 = vld [vmem:[#allocation2] sm:$0xff] }
 0x182   : > { %v943_v14 = vpop.f32.mrb[11].mxu0  ;;  %v942_v21 = vadd.f32 %v941_v12, %v838_v10 }
 0x183   : > { %v944_v19 = vadd.f32 %v943_v14, %v838_v10 }
 0x185   : > { %v971_v24 = vpack.c.bf16 %v944_v19, %v940_v18 }
 0x187   : > { %v947_v15 = vpop.f32.mrb[12].mxu0 }
 0x188   : > { %v949_v17 = vpop.f32.mrb[13].mxu0  ;;  %v948_v25 = vadd.f32 %v947_v15, %v843_v13 }
 0x189   : > { %v951_v20 = vpop.f32.mrb[14].mxu0  ;;  %v950_v26 = vadd.f32 %v949_v17, %v843_v13 }
 0x18a   : > { %v953_v23 = vpop.f32.mrb[15].mxu0  ;;  %v952_v27 = vadd.f32 %v951_v20, %v848_v22  ;;  %v1035_v20 = vld [vmem:[#allocation3] sm:$0xff] }
 0x18b   : > { %v954_v29 = vadd.f32 %v953_v23, %v848_v22 }
 0x18c   : > { %v1052_v30 = vpack.c.bf16 %v952_v27, %v948_v25  ;;  %v1121_v27 = vld [vmem:[#allocation12 + $0x8] sm:$0xff] }
 0x18d   : > { %v1053_v31 = vpack.c.bf16 %v954_v29, %v950_v26  ;;  %v1120_v26 = vld [vmem:[#allocation12] sm:$0xff]  ;;  %v1122_v29 = vld [vmem:[#allocation12 + $0x10] sm:$0xff] }
 0x18f   : > { %v957_v58 = vpop.f32.mrb[16].mxu0 }
 0x247   : > { %v702_v60 = vpop.f32.mrb[0].mxu1 }
 0x248   : > { %v703_v61 = vadd.f32 %v702_v60, %v632_v59  ;;  %v1417_v62 = vpop.f32.mrb[1].mxu1  ;;  %v959_v59 = vpop.f32.mrb[17].mxu0  ;;  %v819_v60 = vld [vmem:[%s2243_s9 + $0x38] sm:$0xff] }
 0x24a   : > { %1427 = vmatmul.mubr.msk.f32.vlgmr.msra.gmra.mrb[2].mxu1 %vm541_vm0, %v703_v61  ;;  %v961_v61 = vpop.f32.mrb[18].mxu0 }
 0x24b   : > { %1007 = vmatprep.mubr.bf16.mxu1 %v1800_v28  ;;  %976 = vmatpush1.bf16.msra.mxu1 %v968_v7  ;;  %v970_v28 = vpack.c.bf16 %v942_v21, %v938_v16  ;;  %v963_v62 = vpop.f32.mrb[19].mxu0 }
 0x24c   : > { %977 = vmatprep.subr.bf16.mxu1 %v971_v24 }
 0x24f   : > { %978 = vmatpush1.bf16.msra.mxu1 %v970_v28  ;;  %v1465_v28 = vpack.c.bf16 %v1121_v27, %v1120_v26 }
 0x250   : > { %1056 = vmatprep.subr.bf16.mxu1 %v1053_v31 }
 0x31d   : > { %v780_v35 = vpop.f32.mrb[2].mxu1 }
 0x31e   : > { %v781_v36 = vadd.f32 %v780_v35, %v710_v34  ;;  %v1428_v38 = vpop.f32.mrb[3].mxu1 }
 0x320   : > { %v785_v39 = vmul.f32 0.5, %v781_v36 }
 0x322   : > { %v789_v41 = vrot.slane %v785_v39, %v788_v37 }
 0x324   : > { %v790_v42 = vmul.f32 %v789_v41, %v2151_v40 }
 0x326   : > { %791 = vst.msk [vmem:[#allocation5] sm:$0xff] %vm541_vm0, %v790_v42 }
 0x32d   : > { %v966_v43 = vld [vmem:[#allocation5] sm:$0xff] }
 0x32e   : > { %v967_v44 = vpack.c.bf16 %v966_v43, %v966_v43 }
 0x330   : > { %1358 = vmatmul.mubr.msk.bf16.vlgmr.msra.gmra.mrb[4].mxu1 %vm541_vm0, %v967_v44 }
 0x331   : > { %1057 = vmatpush1.bf16.xpose.msra.mxu1 %v1052_v30  ;;  %v1123_v30 = vld [vmem:[#allocation12 + $0x18] sm:$0xff] }
 0x332   : > { %v1468_v31 = vpack.c.bf16 %v1123_v30, %v1122_v29 }
 0x403   : > { %v1009_v47 = vpop.f32.mrb[4].mxu1 }
 0x404   : > { %v1011_v48 = vpop.f32.mrb[5].mxu1 }
 0x405   : > { %v1013_v49 = vpop.f32.mrb[6].mxu1  ;;  %v1017_v50 = vmax.f32 %v1009_v47, %v1011_v48 }
 0x406   : > { %v1014_v51 = vpop.f32.mrb[7].mxu1 }
 0x407   : > { %1018 = vmax.xlane.f32.xlu0 %v1017_v50  ;;  %v1124_v50 = vld [vmem:[%s2279_s23] sm:$0x1] }
 0x494   : > { %v1019_v53 = vpop.xlane.xlu0 %1018 }
 0x495   : > { %v1020_v54 = vmax.f32 %v1016_v52, %v1019_v53 }
 0x497   : > { %v1021_v55 = vsub.f32 %v1016_v52, %v1020_v54  ;;  %1098 = vst.msk [vmem:[#allocation2] sm:$0xff] %vm538_vm3, %v1020_v54  ;;  %1026 = vperm.xlu1 %1574, %v1020_v54  }
 0x499   : > { %v1022_v57 = vmul.f32 1.442695, %v1021_v55 }
 0x49b   : > { %1579 = vpow2.f32 %v1022_v57  ;;  %852 = vperm.xlu1 %1574, %v818_v56  }
 0x49f   : > { %857 = vperm.xlu1 %1574, %v819_v60  }
 0x4a5   : > { %v1580_v63 = vpop.eup %1579 }
 0x4a6   : > { %1046 = vperm.xlu0 %1573, %v1580_v63   ;;  %v1036_v21 = vmul.f32 %v1580_v63, %v1035_v20 }
 0x516   : > { %v1027_v2 = vpop.permute.xlu1 %1026 }
 0x517   : > { %v1029_v3 = vsub.f32 %v1009_v47, %v1027_v2  ;;  %v1030_v4 = vsub.f32 %v1011_v48, %v1027_v2 }
 0x519   : > { %v1031_v5 = vmul.f32 1.442695, %v1029_v3  ;;  %v1033_v6 = vmul.f32 1.442695, %v1030_v4 }
 0x51a   : > { %v853_v7 = vpop.permute.xlu1 %852 }
 0x51b   : > { %1581 = vpow2.f32 %v1031_v5  ;;  %v958_v9 = vadd.f32 %v957_v58, %v853_v7  ;;  %v960_v10 = vadd.f32 %v959_v59, %v853_v7 }
 0x51c   : > { %1583 = vpow2.f32 %v1033_v6 }
 0x51e   : > { %v858_v8 = vpop.permute.xlu1 %857 }
 0x51f   : > { %v962_v11 = vadd.f32 %v961_v61, %v858_v8  ;;  %v964_v12 = vadd.f32 %v963_v62, %v858_v8 }
 0x521   : > { %v1054_v13 = vpack.c.bf16 %v962_v11, %v958_v9  ;;  %v1055_v14 = vpack.c.bf16 %v964_v12, %v960_v10 }
 0x523   : > { %1058 = vmatprep.subr.bf16.mxu1 %v1055_v14 }
 0x524   : > { %1059 = vmatpush1.bf16.xpose.msra.mxu1 %v1054_v13 }
 0x525   : > { %v1582_v15 = vpop.eup %1581  ;;  %1464 = vmatprep.subr.bf16.mxu1 %v1797_v0  ;;  %v1047_v32 = vpop.permute.xlu0 %1046 }
 0x526   : > { %v1584_v16 = vpop.eup %1583  ;;  %v1050_v19 = vpack.c.bf16 %v1582_v15, %v1582_v15 }
 0x527   : > { %v1051_v17 = vpack.c.bf16 %v1584_v16, %v1584_v16  ;;  %v1037_v18 = vadd.f32 %v1584_v16, %v1582_v15 }
 0x529   : > { %1088 = vmatprep.mubr.bf16.mxu1 %v1051_v17  ;;  %1038 = vadd.xlane.f32.xlu1 %v1037_v18 }
 0x52b   : > { %1089 = vmatmul.mubr.bf16.vlgmr.msra.gmra.mrb[8].mxu1 %v1050_v19 }
 0x52c   : > { %1437 = vmatprep.mubr.msk.f32.mxu1 %vm1799_vm1, %v1798_v1  ;;  %1466 = vmatpush3.bf16.msra.mxu1 %v1465_v28  ;;  %v1043_v1 = vld [vmem:[#allocation4] sm:$0xff] }
 0x52d   : > { %1467 = vmatprep.subr.bf16.mxu1 %v1797_v0  ;;  %v1049_v33 = vmul.f32 %v1047_v32, %v1043_v1 }
 0x530   : > { %1469 = vmatpush3.bf16.msra.mxu1 %v1468_v31 }
 0x5b6   : > { %v1039_v22 = vpop.xlane.xlu1 %1038 }
 0x5b7   : > { %v1040_v23 = vadd.f32 %v1039_v22, %v1036_v21 }
 0x5b9   : > { %1042 = vst.msk [vmem:[#allocation3] sm:$0xff] %vm538_vm3, %v1040_v23 }
 0x5c0   : > { %v1102_v24 = vld [vmem:[#allocation3] sm:$0xff] }
 0x5c1   : > { %1585 = vrcp.f32 %v1102_v24 }
 0x5cb   : > { %v1586_v25 = vpop.eup %1585 }
 0x5cc   : > { %1107 = vperm.xlu0 %1573, %v1586_v25  }
 0x5fe   : > { %v1090_v34 = vpop.f32.mrb[8].mxu1 }
 0x5ff   : > { %v1096_v35 = vadd.f32 %v1090_v34, %v1049_v33  ;;  %v1092_v36 = vpop.f32.mrb[9].mxu1 }
 0x600   : > { %v1093_v37 = vpop.f32.mrb[10].mxu1 }
 0x601   : > { %1097 = vst.msk [vmem:[#allocation4] sm:$0xff] %vm541_vm0, %v1096_v35  ;;  %v1094_v38 = vpop.f32.mrb[11].mxu1 }
 0x608   : > { %v1104_v39 = vld [vmem:[#allocation4] sm:$0xff] }
 0x64b   : > { %v1108_v41 = vpop.permute.xlu0 %1107 }
 0x64c   : > { %v1110_v42 = vmul.f32 %v1108_v41, %v1104_v39 }
 0x64e   : > { %v1112_v0 = vmul.f32 %v1110_v42, %v2151_v40 }
 0x650   : > { %v1113_v43 = vsel %vm541_vm0, %v1112_v0, 0.0 }
 0x651   : > { %v1114_v44 = vrot.slane %v1113_v43, 4 }
 0x653   : > { %v1115_v45 = vadd.f32 %v1114_v44, %v1113_v43 }
 0x655   : > { %v1116_v46 = vrot.slane %v1115_v45, 2 }
 0x657   : > { %v1117_v47 = vadd.f32 %v1116_v46, %v1115_v45 }
 0x659   : > { %v1118_v48 = vrot.slane %v1117_v47, 1 }
 0x65b   : > { %v1119_v49 = vadd.f32 %v1118_v48, %v1117_v47 }
 0x65d   : > { %1438 = vmatmul.mubr.msk.f32.vlgmr.msra.gmra.mrb[12].mxu1 %vm541_vm0, %v1119_v49 }
 0x730   : > { %v1194_v40 = vpop.f32.mrb[12].mxu1 }
 0x731   : > { %v1195_v51 = vadd.f32 %v1194_v40, %v1124_v50  ;;  %v1439_v52 = vpop.f32.mrb[13].mxu1 }
 0x733   : > { %1199 = vst.msk [vmem:[%s519_s24] sm:$0x1] %vm1198_vm4, %v1195_v51 }
 0x734   : > { %1712 = shalt.err (!%p1709_p6)
}
 0x735   : > { %s1713_s20 = scalar_lea.hbm %s2187_s27, 16  ;;  %s1717_s22 = scalar_lea.hbm %s2281_s15, 32 }
 0x736   : > { %p1714_p7 = scmp.ne.s32.totalorder %s2187_s27, %s1713_s20  ;;  %p1718_p0 = scmp.lt.u32.totalorder %s2187_s27, %s2281_s15 }
 0x737   : > { %p1719_p2 = scmp.lt.u32.totalorder %s1717_s22, %s1713_s20  ;;  %p1721_p1 = scmp.lt.u32.totalorder %s1713_s20, %s2187_s27 }
 0x738   : > { %p1715_p9 = pnand %p1714_p7, %p2282_p4 }
 0x739   : > { %p1720_p13 = por %p1719_p2, %p1718_p0 }
 0x73a   : > { %p1716_p12 = pneg %p1715_p9 }
 0x73b   : > { %p1722_p8 = por %p1721_p1, %p1720_p13 }
 0x73d   : > { %p1723_p10 = pnand %p1722_p8, %p1716_p12 }
 0x73f   : > { %1726 = shalt.err (!%p1723_p10)
}
 0x740   : > { %1486 = dma.vmem_to_hbm [thread:$0]  (%p2282_p4), %s2189_s17, 16, %s2187_s27, %s1201_s13  }
 0x741 PF: > { %s2283_s24 = sld [smem:[#allocation22_spill]]  ;;  %s2284_s11 = sld [smem:[#allocation19_spill]] }
 0x742   : > { %s2285_s21 = sld [smem:[#allocation24_spill]] }
 0x747   : > { %p1513_p11 = scmp.ge.s32.totalorder %s2283_s24, 2  ;;  %s1225_s29 = sand.u32 1, %s2284_s11  }
 0x748   : > { %p2286_p3 = scmp.ne.s32.totalorder %s2285_s21, 0  ;;  %s1226_s30 = scalar_lea.sflag [#allocation8], %s1225_s29 }
 0x74a   : > { %p1502_p5 = pnand %p1513_p11, %p2286_p3 }
 0x74c   : > { %1764 = dma.done.wait (!%p1502_p5), %s1226_s30, 16  }
 0x74d   : > { %1766 = vsyncadd (!%p1502_p5), %s1226_s30, 4294967280  ;;  %s29_s30 = sadd.s32 1, %s2283_s24   ;;  %s2287_s28 = sld [smem:[#allocation20_spill]] }
 0x74e   : > { %p26_p6 = scmp.ge.s32.totalorder %s29_s30, 4   ;;  %s2288_s27 = sld [smem:[#allocation25_spill]] }
 0x74f   : > { %s2289_s18 = sld [smem:[#allocation21_spill]]  ;;  %s2290_s29 = sld [smem:[#allocation23_spill]] }
 0x750   : > { %s2291_s25 = smov %s1773_s26  ;;  %28 = sbr.rel (!%p26_p6) target bundleno = 11 (0xb), region = 135 }
 0x753   : > { %s2292_s26 = smov %s2287_s28 }
 0x755   : > { %s2293_s28 = smov %s2289_s18 }
 0x757   :  { %1230 = vsyncpa [#allocation7], 1 }
 0x758   :  { %1232 = vsyncpa [#allocation7 + $0x1], 1 }
 0x759   :  { %1233 = vsyncpa [#allocation10], 1 }
 0x75a   :  { %1234 = vsyncpa [#allocation13], 1 }
 0x75b   :  { %1235 = vsyncpa [#allocation8], 1 }
 0x75c   :  { %1237 = vsyncpa [#allocation8 + $0x1], 1 }

</bundles_post_ra>
